<compile_context>
chip_gen: v7x
topology: tpu7x:2x2x1
jax: 0.10.0
libtpu: 0.0.40
codegen_flags: <defaults>
</compile_context>

<pallas_src>
import functools

import jax
import jax.numpy as jnp
from jax.experimental import pallas as pl
from jax.experimental.pallas import tpu as pltpu

HIDDEN = 10                         # nn.LSTM(hidden_size=10)
IN_FEATS = 12 * 4                   # nn.LSTM(input_size=48)
NUM_CLASSES = 4                     # nn.Linear(10, 4)
OUT_W = 2 * HIDDEN + NUM_CLASSES    # fused output lanes: [h_fwd | h_bwd | log_probs]


def _image_wise_kernel(xp_ref, wih_ref, b_ref, whh_ref, fcw_ref, fcb_ref,
                       out_ref, *, seq_len, n_seq):
    """One block of `n_seq` independent sequences of length `seq_len`.

    xp_ref : (T*nb, 2F)  time-major packed rows [x_t | x_{T-1-t}]
    wih_ref: (2F, 8H)    block-diag input projection, gate lanes
                         [i_f i_b f_f f_b o_f o_b g_f g_b]
    b_ref  : (1, 8H)     b_ih + b_hh, same lane order
    whh_ref: (2H, 8H)    block-diag recurrent weights, row blocks [h_f | h_b]
    fcw_ref: (H, 4)      nn.Linear(10, 4) weight (transposed), fcb_ref: (1, 4)
    out_ref: (T*nb, 2H+4) lanes [h_fwd | h_bwd | log_probs]
    """
    T, nb, H = seq_len, n_seq, HIDDEN

    # Hoisted input projection for both directions / all timesteps: one MXU pass.
    xw = (jnp.dot(xp_ref[...], wih_ref[...], preferred_element_type=jnp.float32)
          + b_ref[...])                                          # (T*nb, 8H)
    whh = whh_ref[...]                                           # (2H, 8H)

    # Fused bidirectional recurrence: both chains share one matmul, one sigmoid
    # slab and one tanh per step.  State lanes [fwd H | bwd H]; sublanes = seqs.
    h = jnp.zeros((nb, 2 * H), jnp.float32)
    c = jnp.zeros((nb, 2 * H), jnp.float32)
    hs = []
    for t in range(T):                                           # fully unrolled (T static)
        gates = (jnp.dot(h, whh, preferred_element_type=jnp.float32)
                 + xw[t * nb:(t + 1) * nb, :])                   # (nb, 8H)
        # sigmoid(x) = 0.5*tanh(0.5*x) + 0.5 -> single EUP push over 6H lanes.
        sg = 0.5 * jnp.tanh(0.5 * gates[:, 0:6 * H]) + 0.5
        g = jnp.tanh(gates[:, 6 * H:8 * H])                      # (nb, 2H)
        i = sg[:, 0:2 * H]
        f = sg[:, 2 * H:4 * H]
        o = sg[:, 4 * H:6 * H]
        c = f * c + i * g
        h = o * jnp.tanh(c)
        hs.append(h)

    # Epilogue (off the serial chain): bidirectional output is fwd hidden at t
    # paired with bwd hidden produced at step T-1-t.
    hf_all = jnp.concatenate([hs[t][:, 0:H] for t in range(T)], axis=0)          # (T*nb, H)
    hb_all = jnp.concatenate([hs[T - 1 - t][:, H:2 * H] for t in range(T)], axis=0)

    # nn.Dropout(p=0.5): eval-mode identity.
    # TODO(synk): the original PyTorch forward feeds the LSTM return tuple /
    # 20-dim bidirectional output into nn.Linear(10, 4), a type/shape mismatch;
    # here fc consumes the forward-direction hidden slice (10 dims).
    logits = (jnp.dot(hf_all, fcw_ref[...], preferred_element_type=jnp.float32)
              + fcb_ref[...])                                    # (T*nb, 4)
    m = jnp.max(logits, axis=1, keepdims=True)
    z = logits - m
    lse = jnp.log(jnp.sum(jnp.exp(z), axis=1, keepdims=True))

    # Single fused store: lstm_out and log-softmax share one output DMA.
    out_ref[...] = jnp.concatenate([hf_all, hb_all, z - lse], axis=1)


def _gate_blocks(w):
    """Split PyTorch (i, f, g, o) gate columns of a (..., 4H) array."""
    H = HIDDEN
    return w[..., 0:H], w[..., H:2 * H], w[..., 2 * H:3 * H], w[..., 3 * H:4 * H]


def _pack_gate_lanes(fwd, bwd):
    """(..., 4H) fwd/bwd in PyTorch (i,f,g,o) order -> (..., 8H) kernel lane
    layout [i_f i_b f_f f_b o_f o_b g_f g_b]."""
    i_f, f_f, g_f, o_f = _gate_blocks(fwd)
    i_b, f_b, g_b, o_b = _gate_blocks(bwd)
    return jnp.concatenate([i_f, i_b, f_f, f_b, o_f, o_b, g_f, g_b], axis=-1)


def _pack_params(params):
    """Wrapper-side layout plumbing: block-diagonal fused weights + fused bias."""
    z_ih = jnp.zeros_like(params["wih_f"])
    wih_pack = jnp.concatenate(
        [_pack_gate_lanes(params["wih_f"], jnp.zeros_like(params["wih_b"])),
         _pack_gate_lanes(z_ih, params["wih_b"])], axis=0)               # (2F, 8H)
    z_hh = jnp.zeros_like(params["whh_f"])
    whh_pack = jnp.concatenate(
        [_pack_gate_lanes(params["whh_f"], jnp.zeros_like(params["whh_b"])),
         _pack_gate_lanes(z_hh, params["whh_b"])], axis=0)               # (2H, 8H)
    b_pack = _pack_gate_lanes(params["b_f"], params["b_b"])              # (1, 8H)
    return wih_pack, b_pack, whh_pack


def image_wise_forward(x, params, *, seq_block=8):
    """Forward pass.

    x: (T, C, H, W) single sequence (the module's batch dim acts as the sequence
       length of the unbatched nn.LSTM), or (N, T, C, H, W) for N independent
       sequences batched into one pallas_call.
    Returns (log_probs, lstm_out): shapes ([N,] T, 4) and ([N,] T, 2H).
    """
    single = (x.ndim == 4)
    if single:
        x = x[None]
    N, T = x.shape[0], x.shape[1]
    F = IN_FEATS
    x2 = x.reshape(N, T, -1).astype(jnp.float32)
    assert x2.shape[-1] == F, x2.shape

    # Pad sequence count to a multiple of the per-block count (padded seqs are
    # independent garbage rows, dropped after the call).
    nb = seq_block
    pad = (-N) % nb
    if pad:
        x2 = jnp.concatenate([x2, jnp.zeros((pad, T, F), jnp.float32)], axis=0)
    n_pad = N + pad
    nblk = n_pad // nb

    # Time-major packed input rows [x_t | x_{T-1-t}]: one block-diag matmul then
    # projects both directions, and each step reads a contiguous (nb, 8H) slab.
    xp = jnp.concatenate([x2, x2[:, ::-1, :]], axis=-1)                  # (n_pad, T, 2F)
    xp = xp.reshape(nblk, nb, T, 2 * F).transpose(0, 2, 1, 3)            # (nblk, T, nb, 2F)
    xp = xp.reshape(nblk, T * nb, 2 * F)

    wih_pack, b_pack, whh_pack = _pack_params(params)

    kernel = functools.partial(_image_wise_kernel, seq_len=T, n_seq=nb)
    out = pl.pallas_call(
        kernel,
        out_shape=jax.ShapeDtypeStruct((nblk, T * nb, OUT_W), jnp.float32),
        grid=(nblk,),
        in_specs=[
            pl.BlockSpec((None, T * nb, 2 * F), lambda i: (i, 0, 0)),
            pl.BlockSpec((2 * F, 8 * HIDDEN), lambda i: (0, 0)),
            pl.BlockSpec((1, 8 * HIDDEN), lambda i: (0, 0)),
            pl.BlockSpec((2 * HIDDEN, 8 * HIDDEN), lambda i: (0, 0)),
            pl.BlockSpec((HIDDEN, NUM_CLASSES), lambda i: (0, 0)),
            pl.BlockSpec((1, NUM_CLASSES), lambda i: (0, 0)),
        ],
        out_specs=pl.BlockSpec((None, T * nb, OUT_W), lambda i: (i, 0, 0)),
        compiler_params=pltpu.CompilerParams(
            dimension_semantics=("parallel",)),   # v7x megacore shards seq blocks
    )(xp, wih_pack, b_pack, whh_pack, params["fc_w"], params["fc_b"])

    # Unpack: rows are time-major within each block.
    out = out.reshape(nblk, T, nb, OUT_W).transpose(0, 2, 1, 3)          # (nblk, nb, T, OUT_W)
    out = out.reshape(n_pad, T, OUT_W)[:N]
    lstm_out = out[..., 0:2 * HIDDEN]
    log_probs = out[..., 2 * HIDDEN:OUT_W]
    if single:
        return log_probs[0], lstm_out[0]
    return log_probs, lstm_out


def reference_forward(x, params):
    """Pure-JAX reference (PyTorch gate order i,f,g,o, unpermuted params)."""
    single = (x.ndim == 4)
    if single:
        x = x[None]
    N, T = x.shape[0], x.shape[1]
    H = HIDDEN
    x2 = x.reshape(N, T, -1).astype(jnp.float32)

    def run(wih, whh, b, xs):
        def step(carry, x_t):
            h, c = carry
            gates = x_t[None, :] @ wih + h @ whh + b
            i = jax.nn.sigmoid(gates[:, 0:H])
            f = jax.nn.sigmoid(gates[:, H:2 * H])
            g = jnp.tanh(gates[:, 2 * H:3 * H])
            o = jax.nn.sigmoid(gates[:, 3 * H:4 * H])
            c = f * c + i * g
            h = o * jnp.tanh(c)
            return (h, c), h[0]
        h0 = jnp.zeros((1, H), jnp.float32)
        c0 = jnp.zeros((1, H), jnp.float32)
        _, hs = jax.lax.scan(step, (h0, c0), xs)
        return hs                                                       # (T, H)

    def one(seq):
        hf = run(params["wih_f"], params["whh_f"], params["b_f"], seq)
        hb = run(params["wih_b"], params["whh_b"], params["b_b"], seq[::-1])[::-1]
        lstm_out = jnp.concatenate([hf, hb], axis=1)
        logits = hf @ params["fc_w"] + params["fc_b"]
        return jax.nn.log_softmax(logits, axis=1), lstm_out

    log_probs, lstm_out = jax.vmap(one)(x2)
    if single:
        return log_probs[0], lstm_out[0]
    return log_probs, lstm_out


def init_params(key):
    """Deterministic synthetic parameters with the module's shapes.

    LSTM params: PyTorch default uniform(-1/sqrt(H), 1/sqrt(H)), gate order
    (i, f, g, o), stored transposed so y = x @ W + b; b = b_ih + b_hh.
    fc (nn.Linear): weight ~ N(0, 0.01), bias = 0 (per initialize_weights()).
    """
    keys = jax.random.split(key, 9)
    k = 1.0 / float(jnp.sqrt(jnp.float32(HIDDEN)))
    u = lambda kk, shape: jax.random.uniform(kk, shape, jnp.float32, -k, k)
    return dict(
        wih_f=u(keys[0], (IN_FEATS, 4 * HIDDEN)),
        whh_f=u(keys[1], (HIDDEN, 4 * HIDDEN)),
        b_f=u(keys[2], (1, 4 * HIDDEN)) + u(keys[3], (1, 4 * HIDDEN)),
        wih_b=u(keys[4], (IN_FEATS, 4 * HIDDEN)),
        whh_b=u(keys[5], (HIDDEN, 4 * HIDDEN)),
        b_b=u(keys[6], (1, 4 * HIDDEN)) + u(keys[7], (1, 4 * HIDDEN)),
        fc_w=(0.01 * jax.random.normal(keys[8], (HIDDEN, NUM_CLASSES))).astype(jnp.float32),
        fc_b=jnp.zeros((1, NUM_CLASSES), jnp.float32),
    )
    # NOTE: self.classifier (the Sequential MLP) is never called in forward(),
    # so it is intentionally not materialized here.


if __name__ == "__main__":
    key = jax.random.PRNGKey(0)
    pkey, xkey1, xkey2 = jax.random.split(key, 3)
    params = init_params(pkey)

    # Batched path: 16 independent sequences, each the module's (8, 1, 12, 4)
    # NCHW input (C*H*W == 48 == nn.LSTM input_size).
    xb = jax.random.normal(xkey1, (16, 8, 1, 12, 4), jnp.float32)
    log_probs, lstm_out = jax.jit(image_wise_forward)(xb, params)
    jax.block_until_ready((log_probs, lstm_out))

    ref_lp, ref_lo = reference_forward(xb, params)
    assert log_probs.shape == (16, 8, NUM_CLASSES)
    assert lstm_out.shape == (16, 8, 2 * HIDDEN)
    assert bool(jnp.allclose(lstm_out, ref_lo, atol=1e-5, rtol=1e-5))
    assert bool(jnp.allclose(log_probs, ref_lp, atol=1e-5, rtol=1e-5))
    assert bool(jnp.all(jnp.abs(jnp.sum(jnp.exp(log_probs), axis=-1) - 1.0) < 1e-4))

    # Single-sequence path (original module call signature).
    xs = jax.random.normal(xkey2, (8, 1, 12, 4), jnp.float32)
    lp1, lo1 = jax.jit(image_wise_forward)(xs, params)
    jax.block_until_ready((lp1, lo1))
    r_lp1, r_lo1 = reference_forward(xs, params)
    assert lp1.shape == (8, NUM_CLASSES) and lo1.shape == (8, 2 * HIDDEN)
    assert bool(jnp.allclose(lo1, r_lo1, atol=1e-5, rtol=1e-5))
    assert bool(jnp.allclose(lp1, r_lp1, atol=1e-5, rtol=1e-5))

    print("KERNEL_OK")
</pallas_src>

<mosaic_0001>
module attributes {stable_mosaic.version = 11 : i64} {
  func.func @_image_wise_kernel(%arg0: i32, %arg1: memref<1x64x96xf32, #tpu.memory_space<vmem>>, %arg2: memref<96x80xf32, #tpu.memory_space<vmem>>, %arg3: memref<1x80xf32, #tpu.memory_space<vmem>>, %arg4: memref<20x80xf32, #tpu.memory_space<vmem>>, %arg5: memref<10x4xf32, #tpu.memory_space<vmem>>, %arg6: memref<1x4xf32, #tpu.memory_space<vmem>>, %arg7: memref<1x64x24xf32, #tpu.memory_space<vmem>>) attributes {dimension_semantics = [#tpu.dimension_semantics<parallel>], iteration_bounds = array<i64: 2>, scalar_prefetch = 0 : i64, scratch_operands = 0 : i64, tpu.core_type = #tpu.core_type<tc>, window_params = [{transform_indices = @transform_0, window_bounds = array<i64: 1, 64, 96>}, {pipeline_mode = #tpu.pipeline_mode<synchronous>, transform_indices = @transform_1, window_bounds = array<i64: 96, 80>}, {pipeline_mode = #tpu.pipeline_mode<synchronous>, transform_indices = @transform_2, window_bounds = array<i64: 1, 80>}, {pipeline_mode = #tpu.pipeline_mode<synchronous>, transform_indices = @transform_3, window_bounds = array<i64: 20, 80>}, {pipeline_mode = #tpu.pipeline_mode<synchronous>, transform_indices = @transform_4, window_bounds = array<i64: 10, 4>}, {pipeline_mode = #tpu.pipeline_mode<synchronous>, transform_indices = @transform_5, window_bounds = array<i64: 1, 4>}, {transform_indices = @transform_6, window_bounds = array<i64: 1, 64, 24>}]} {
    %c0 = arith.constant 0 : index
    %c0_0 = arith.constant 0 : index
    %c0_1 = arith.constant 0 : index
    %0 = vector.load %arg1[%c0, %c0_0, %c0_1] : memref<1x64x96xf32, #tpu.memory_space<vmem>>, vector<1x64x96xf32>
    %1 = vector.shape_cast %0 : vector<1x64x96xf32> to vector<64x96xf32>
    %c0_2 = arith.constant 0 : index
    %c0_3 = arith.constant 0 : index
    %2 = vector.load %arg2[%c0_2, %c0_3] : memref<96x80xf32, #tpu.memory_space<vmem>>, vector<96x80xf32>
    %cst = arith.constant dense<0.000000e+00> : vector<64x80xf32>
    %3 = tpu.matmul %1, %2, %cst {dimension_numbers = #tpu.dot_dimension_numbers<[1], [0], [0], [1], [0, 0, 1, 1], [], []>} : vector<64x96xf32>, vector<96x80xf32>, vector<64x80xf32> -> vector<64x80xf32>
    %c0_4 = arith.constant 0 : index
    %c0_5 = arith.constant 0 : index
    %4 = vector.load %arg3[%c0_4, %c0_5] : memref<1x80xf32, #tpu.memory_space<vmem>>, vector<1x80xf32>
    %5 = vector.broadcast %4 : vector<1x80xf32> to vector<64x80xf32>
    %6 = arith.addf %3, %5 : vector<64x80xf32>
    %c0_6 = arith.constant 0 : index
    %c0_7 = arith.constant 0 : index
    %7 = vector.load %arg4[%c0_6, %c0_7] : memref<20x80xf32, #tpu.memory_space<vmem>>, vector<20x80xf32>
    %cst_8 = arith.constant 0.000000e+00 : f32
    %8 = vector.broadcast %cst_8 : f32 to vector<8x20xf32>
    %cst_9 = arith.constant 0.000000e+00 : f32
    %9 = vector.broadcast %cst_9 : f32 to vector<8x20xf32>
    %cst_10 = arith.constant dense<0.000000e+00> : vector<8x80xf32>
    %10 = tpu.matmul %8, %7, %cst_10 {dimension_numbers = #tpu.dot_dimension_numbers<[1], [0], [0], [1], [0, 0, 1, 1], [], []>} : vector<8x20xf32>, vector<20x80xf32>, vector<8x80xf32> -> vector<8x80xf32>
    %11 = vector.extract_strided_slice %6 {offsets = [0, 0], sizes = [8, 80], strides = [1, 1]} : vector<64x80xf32> to vector<8x80xf32>
    %12 = arith.addf %10, %11 : vector<8x80xf32>
    %13 = vector.extract_strided_slice %12 {offsets = [0, 0], sizes = [8, 60], strides = [1, 1]} : vector<8x80xf32> to vector<8x60xf32>
    %cst_11 = arith.constant 5.000000e-01 : f32
    %14 = vector.broadcast %cst_11 : f32 to vector<8x60xf32>
    %15 = arith.mulf %14, %13 : vector<8x60xf32>
    %16 = math.tanh %15 : vector<8x60xf32>
    %cst_12 = arith.constant 5.000000e-01 : f32
    %17 = vector.broadcast %cst_12 : f32 to vector<8x60xf32>
    %18 = arith.mulf %17, %16 : vector<8x60xf32>
    %cst_13 = arith.constant 5.000000e-01 : f32
    %19 = vector.broadcast %cst_13 : f32 to vector<8x60xf32>
    %20 = arith.addf %18, %19 : vector<8x60xf32>
    %21 = vector.extract_strided_slice %12 {offsets = [0, 60], sizes = [8, 20], strides = [1, 1]} : vector<8x80xf32> to vector<8x20xf32>
    %22 = math.tanh %21 : vector<8x20xf32>
    %23 = vector.extract_strided_slice %20 {offsets = [0, 0], sizes = [8, 20], strides = [1, 1]} : vector<8x60xf32> to vector<8x20xf32>
    %24 = vector.extract_strided_slice %20 {offsets = [0, 20], sizes = [8, 20], strides = [1, 1]} : vector<8x60xf32> to vector<8x20xf32>
    %25 = vector.extract_strided_slice %20 {offsets = [0, 40], sizes = [8, 20], strides = [1, 1]} : vector<8x60xf32> to vector<8x20xf32>
    %26 = arith.mulf %24, %9 : vector<8x20xf32>
    %27 = arith.mulf %23, %22 : vector<8x20xf32>
    %28 = arith.addf %26, %27 : vector<8x20xf32>
    %29 = math.tanh %28 : vector<8x20xf32>
    %30 = arith.mulf %25, %29 : vector<8x20xf32>
    %cst_14 = arith.constant dense<0.000000e+00> : vector<8x80xf32>
    %31 = tpu.matmul %30, %7, %cst_14 {dimension_numbers = #tpu.dot_dimension_numbers<[1], [0], [0], [1], [0, 0, 1, 1], [], []>} : vector<8x20xf32>, vector<20x80xf32>, vector<8x80xf32> -> vector<8x80xf32>
    %32 = vector.extract_strided_slice %6 {offsets = [8, 0], sizes = [8, 80], strides = [1, 1]} : vector<64x80xf32> to vector<8x80xf32>
    %33 = arith.addf %31, %32 : vector<8x80xf32>
    %34 = vector.extract_strided_slice %33 {offsets = [0, 0], sizes = [8, 60], strides = [1, 1]} : vector<8x80xf32> to vector<8x60xf32>
    %cst_15 = arith.constant 5.000000e-01 : f32
    %35 = vector.broadcast %cst_15 : f32 to vector<8x60xf32>
    %36 = arith.mulf %35, %34 : vector<8x60xf32>
    %37 = math.tanh %36 : vector<8x60xf32>
    %cst_16 = arith.constant 5.000000e-01 : f32
    %38 = vector.broadcast %cst_16 : f32 to vector<8x60xf32>
    %39 = arith.mulf %38, %37 : vector<8x60xf32>
    %cst_17 = arith.constant 5.000000e-01 : f32
    %40 = vector.broadcast %cst_17 : f32 to vector<8x60xf32>
    %41 = arith.addf %39, %40 : vector<8x60xf32>
    %42 = vector.extract_strided_slice %33 {offsets = [0, 60], sizes = [8, 20], strides = [1, 1]} : vector<8x80xf32> to vector<8x20xf32>
    %43 = math.tanh %42 : vector<8x20xf32>
    %44 = vector.extract_strided_slice %41 {offsets = [0, 0], sizes = [8, 20], strides = [1, 1]} : vector<8x60xf32> to vector<8x20xf32>
    %45 = vector.extract_strided_slice %41 {offsets = [0, 20], sizes = [8, 20], strides = [1, 1]} : vector<8x60xf32> to vector<8x20xf32>
    %46 = vector.extract_strided_slice %41 {offsets = [0, 40], sizes = [8, 20], strides = [1, 1]} : vector<8x60xf32> to vector<8x20xf32>
    %47 = arith.mulf %45, %28 : vector<8x20xf32>
    %48 = arith.mulf %44, %43 : vector<8x20xf32>
    %49 = arith.addf %47, %48 : vector<8x20xf32>
    %50 = math.tanh %49 : vector<8x20xf32>
    %51 = arith.mulf %46, %50 : vector<8x20xf32>
    %cst_18 = arith.constant dense<0.000000e+00> : vector<8x80xf32>
    %52 = tpu.matmul %51, %7, %cst_18 {dimension_numbers = #tpu.dot_dimension_numbers<[1], [0], [0], [1], [0, 0, 1, 1], [], []>} : vector<8x20xf32>, vector<20x80xf32>, vector<8x80xf32> -> vector<8x80xf32>
    %53 = vector.extract_strided_slice %6 {offsets = [16, 0], sizes = [8, 80], strides = [1, 1]} : vector<64x80xf32> to vector<8x80xf32>
    %54 = arith.addf %52, %53 : vector<8x80xf32>
    %55 = vector.extract_strided_slice %54 {offsets = [0, 0], sizes = [8, 60], strides = [1, 1]} : vector<8x80xf32> to vector<8x60xf32>
    %cst_19 = arith.constant 5.000000e-01 : f32
    %56 = vector.broadcast %cst_19 : f32 to vector<8x60xf32>
    %57 = arith.mulf %56, %55 : vector<8x60xf32>
    %58 = math.tanh %57 : vector<8x60xf32>
    %cst_20 = arith.constant 5.000000e-01 : f32
    %59 = vector.broadcast %cst_20 : f32 to vector<8x60xf32>
    %60 = arith.mulf %59, %58 : vector<8x60xf32>
    %cst_21 = arith.constant 5.000000e-01 : f32
    %61 = vector.broadcast %cst_21 : f32 to vector<8x60xf32>
    %62 = arith.addf %60, %61 : vector<8x60xf32>
    %63 = vector.extract_strided_slice %54 {offsets = [0, 60], sizes = [8, 20], strides = [1, 1]} : vector<8x80xf32> to vector<8x20xf32>
    %64 = math.tanh %63 : vector<8x20xf32>
    %65 = vector.extract_strided_slice %62 {offsets = [0, 0], sizes = [8, 20], strides = [1, 1]} : vector<8x60xf32> to vector<8x20xf32>
    %66 = vector.extract_strided_slice %62 {offsets = [0, 20], sizes = [8, 20], strides = [1, 1]} : vector<8x60xf32> to vector<8x20xf32>
    %67 = vector.extract_strided_slice %62 {offsets = [0, 40], sizes = [8, 20], strides = [1, 1]} : vector<8x60xf32> to vector<8x20xf32>
    %68 = arith.mulf %66, %49 : vector<8x20xf32>
    %69 = arith.mulf %65, %64 : vector<8x20xf32>
    %70 = arith.addf %68, %69 : vector<8x20xf32>
    %71 = math.tanh %70 : vector<8x20xf32>
    %72 = arith.mulf %67, %71 : vector<8x20xf32>
    %cst_22 = arith.constant dense<0.000000e+00> : vector<8x80xf32>
    %73 = tpu.matmul %72, %7, %cst_22 {dimension_numbers = #tpu.dot_dimension_numbers<[1], [0], [0], [1], [0, 0, 1, 1], [], []>} : vector<8x20xf32>, vector<20x80xf32>, vector<8x80xf32> -> vector<8x80xf32>
    %74 = vector.extract_strided_slice %6 {offsets = [24, 0], sizes = [8, 80], strides = [1, 1]} : vector<64x80xf32> to vector<8x80xf32>
    %75 = arith.addf %73, %74 : vector<8x80xf32>
    %76 = vector.extract_strided_slice %75 {offsets = [0, 0], sizes = [8, 60], strides = [1, 1]} : vector<8x80xf32> to vector<8x60xf32>
    %cst_23 = arith.constant 5.000000e-01 : f32
    %77 = vector.broadcast %cst_23 : f32 to vector<8x60xf32>
    %78 = arith.mulf %77, %76 : vector<8x60xf32>
    %79 = math.tanh %78 : vector<8x60xf32>
    %cst_24 = arith.constant 5.000000e-01 : f32
    %80 = vector.broadcast %cst_24 : f32 to vector<8x60xf32>
    %81 = arith.mulf %80, %79 : vector<8x60xf32>
    %cst_25 = arith.constant 5.000000e-01 : f32
    %82 = vector.broadcast %cst_25 : f32 to vector<8x60xf32>
    %83 = arith.addf %81, %82 : vector<8x60xf32>
    %84 = vector.extract_strided_slice %75 {offsets = [0, 60], sizes = [8, 20], strides = [1, 1]} : vector<8x80xf32> to vector<8x20xf32>
    %85 = math.tanh %84 : vector<8x20xf32>
    %86 = vector.extract_strided_slice %83 {offsets = [0, 0], sizes = [8, 20], strides = [1, 1]} : vector<8x60xf32> to vector<8x20xf32>
    %87 = vector.extract_strided_slice %83 {offsets = [0, 20], sizes = [8, 20], strides = [1, 1]} : vector<8x60xf32> to vector<8x20xf32>
    %88 = vector.extract_strided_slice %83 {offsets = [0, 40], sizes = [8, 20], strides = [1, 1]} : vector<8x60xf32> to vector<8x20xf32>
    %89 = arith.mulf %87, %70 : vector<8x20xf32>
    %90 = arith.mulf %86, %85 : vector<8x20xf32>
    %91 = arith.addf %89, %90 : vector<8x20xf32>
    %92 = math.tanh %91 : vector<8x20xf32>
    %93 = arith.mulf %88, %92 : vector<8x20xf32>
    %cst_26 = arith.constant dense<0.000000e+00> : vector<8x80xf32>
    %94 = tpu.matmul %93, %7, %cst_26 {dimension_numbers = #tpu.dot_dimension_numbers<[1], [0], [0], [1], [0, 0, 1, 1], [], []>} : vector<8x20xf32>, vector<20x80xf32>, vector<8x80xf32> -> vector<8x80xf32>
    %95 = vector.extract_strided_slice %6 {offsets = [32, 0], sizes = [8, 80], strides = [1, 1]} : vector<64x80xf32> to vector<8x80xf32>
    %96 = arith.addf %94, %95 : vector<8x80xf32>
    %97 = vector.extract_strided_slice %96 {offsets = [0, 0], sizes = [8, 60], strides = [1, 1]} : vector<8x80xf32> to vector<8x60xf32>
    %cst_27 = arith.constant 5.000000e-01 : f32
    %98 = vector.broadcast %cst_27 : f32 to vector<8x60xf32>
    %99 = arith.mulf %98, %97 : vector<8x60xf32>
    %100 = math.tanh %99 : vector<8x60xf32>
    %cst_28 = arith.constant 5.000000e-01 : f32
    %101 = vector.broadcast %cst_28 : f32 to vector<8x60xf32>
    %102 = arith.mulf %101, %100 : vector<8x60xf32>
    %cst_29 = arith.constant 5.000000e-01 : f32
    %103 = vector.broadcast %cst_29 : f32 to vector<8x60xf32>
    %104 = arith.addf %102, %103 : vector<8x60xf32>
    %105 = vector.extract_strided_slice %96 {offsets = [0, 60], sizes = [8, 20], strides = [1, 1]} : vector<8x80xf32> to vector<8x20xf32>
    %106 = math.tanh %105 : vector<8x20xf32>
    %107 = vector.extract_strided_slice %104 {offsets = [0, 0], sizes = [8, 20], strides = [1, 1]} : vector<8x60xf32> to vector<8x20xf32>
    %108 = vector.extract_strided_slice %104 {offsets = [0, 20], sizes = [8, 20], strides = [1, 1]} : vector<8x60xf32> to vector<8x20xf32>
    %109 = vector.extract_strided_slice %104 {offsets = [0, 40], sizes = [8, 20], strides = [1, 1]} : vector<8x60xf32> to vector<8x20xf32>
    %110 = arith.mulf %108, %91 : vector<8x20xf32>
    %111 = arith.mulf %107, %106 : vector<8x20xf32>
    %112 = arith.addf %110, %111 : vector<8x20xf32>
    %113 = math.tanh %112 : vector<8x20xf32>
    %114 = arith.mulf %109, %113 : vector<8x20xf32>
    %cst_30 = arith.constant dense<0.000000e+00> : vector<8x80xf32>
    %115 = tpu.matmul %114, %7, %cst_30 {dimension_numbers = #tpu.dot_dimension_numbers<[1], [0], [0], [1], [0, 0, 1, 1], [], []>} : vector<8x20xf32>, vector<20x80xf32>, vector<8x80xf32> -> vector<8x80xf32>
    %116 = vector.extract_strided_slice %6 {offsets = [40, 0], sizes = [8, 80], strides = [1, 1]} : vector<64x80xf32> to vector<8x80xf32>
    %117 = arith.addf %115, %116 : vector<8x80xf32>
    %118 = vector.extract_strided_slice %117 {offsets = [0, 0], sizes = [8, 60], strides = [1, 1]} : vector<8x80xf32> to vector<8x60xf32>
    %cst_31 = arith.constant 5.000000e-01 : f32
    %119 = vector.broadcast %cst_31 : f32 to vector<8x60xf32>
    %120 = arith.mulf %119, %118 : vector<8x60xf32>
    %121 = math.tanh %120 : vector<8x60xf32>
    %cst_32 = arith.constant 5.000000e-01 : f32
    %122 = vector.broadcast %cst_32 : f32 to vector<8x60xf32>
    %123 = arith.mulf %122, %121 : vector<8x60xf32>
    %cst_33 = arith.constant 5.000000e-01 : f32
    %124 = vector.broadcast %cst_33 : f32 to vector<8x60xf32>
    %125 = arith.addf %123, %124 : vector<8x60xf32>
    %126 = vector.extract_strided_slice %117 {offsets = [0, 60], sizes = [8, 20], strides = [1, 1]} : vector<8x80xf32> to vector<8x20xf32>
    %127 = math.tanh %126 : vector<8x20xf32>
    %128 = vector.extract_strided_slice %125 {offsets = [0, 0], sizes = [8, 20], strides = [1, 1]} : vector<8x60xf32> to vector<8x20xf32>
    %129 = vector.extract_strided_slice %125 {offsets = [0, 20], sizes = [8, 20], strides = [1, 1]} : vector<8x60xf32> to vector<8x20xf32>
    %130 = vector.extract_strided_slice %125 {offsets = [0, 40], sizes = [8, 20], strides = [1, 1]} : vector<8x60xf32> to vector<8x20xf32>
    %131 = arith.mulf %129, %112 : vector<8x20xf32>
    %132 = arith.mulf %128, %127 : vector<8x20xf32>
    %133 = arith.addf %131, %132 : vector<8x20xf32>
    %134 = math.tanh %133 : vector<8x20xf32>
    %135 = arith.mulf %130, %134 : vector<8x20xf32>
    %cst_34 = arith.constant dense<0.000000e+00> : vector<8x80xf32>
    %136 = tpu.matmul %135, %7, %cst_34 {dimension_numbers = #tpu.dot_dimension_numbers<[1], [0], [0], [1], [0, 0, 1, 1], [], []>} : vector<8x20xf32>, vector<20x80xf32>, vector<8x80xf32> -> vector<8x80xf32>
    %137 = vector.extract_strided_slice %6 {offsets = [48, 0], sizes = [8, 80], strides = [1, 1]} : vector<64x80xf32> to vector<8x80xf32>
    %138 = arith.addf %136, %137 : vector<8x80xf32>
    %139 = vector.extract_strided_slice %138 {offsets = [0, 0], sizes = [8, 60], strides = [1, 1]} : vector<8x80xf32> to vector<8x60xf32>
    %cst_35 = arith.constant 5.000000e-01 : f32
    %140 = vector.broadcast %cst_35 : f32 to vector<8x60xf32>
    %141 = arith.mulf %140, %139 : vector<8x60xf32>
    %142 = math.tanh %141 : vector<8x60xf32>
    %cst_36 = arith.constant 5.000000e-01 : f32
    %143 = vector.broadcast %cst_36 : f32 to vector<8x60xf32>
    %144 = arith.mulf %143, %142 : vector<8x60xf32>
    %cst_37 = arith.constant 5.000000e-01 : f32
    %145 = vector.broadcast %cst_37 : f32 to vector<8x60xf32>
    %146 = arith.addf %144, %145 : vector<8x60xf32>
    %147 = vector.extract_strided_slice %138 {offsets = [0, 60], sizes = [8, 20], strides = [1, 1]} : vector<8x80xf32> to vector<8x20xf32>
    %148 = math.tanh %147 : vector<8x20xf32>
    %149 = vector.extract_strided_slice %146 {offsets = [0, 0], sizes = [8, 20], strides = [1, 1]} : vector<8x60xf32> to vector<8x20xf32>
    %150 = vector.extract_strided_slice %146 {offsets = [0, 20], sizes = [8, 20], strides = [1, 1]} : vector<8x60xf32> to vector<8x20xf32>
    %151 = vector.extract_strided_slice %146 {offsets = [0, 40], sizes = [8, 20], strides = [1, 1]} : vector<8x60xf32> to vector<8x20xf32>
    %152 = arith.mulf %150, %133 : vector<8x20xf32>
    %153 = arith.mulf %149, %148 : vector<8x20xf32>
    %154 = arith.addf %152, %153 : vector<8x20xf32>
    %155 = math.tanh %154 : vector<8x20xf32>
    %156 = arith.mulf %151, %155 : vector<8x20xf32>
    %cst_38 = arith.constant dense<0.000000e+00> : vector<8x80xf32>
    %157 = tpu.matmul %156, %7, %cst_38 {dimension_numbers = #tpu.dot_dimension_numbers<[1], [0], [0], [1], [0, 0, 1, 1], [], []>} : vector<8x20xf32>, vector<20x80xf32>, vector<8x80xf32> -> vector<8x80xf32>
    %158 = vector.extract_strided_slice %6 {offsets = [56, 0], sizes = [8, 80], strides = [1, 1]} : vector<64x80xf32> to vector<8x80xf32>
    %159 = arith.addf %157, %158 : vector<8x80xf32>
    %160 = vector.extract_strided_slice %159 {offsets = [0, 0], sizes = [8, 60], strides = [1, 1]} : vector<8x80xf32> to vector<8x60xf32>
    %cst_39 = arith.constant 5.000000e-01 : f32
    %161 = vector.broadcast %cst_39 : f32 to vector<8x60xf32>
    %162 = arith.mulf %161, %160 : vector<8x60xf32>
    %163 = math.tanh %162 : vector<8x60xf32>
    %cst_40 = arith.constant 5.000000e-01 : f32
    %164 = vector.broadcast %cst_40 : f32 to vector<8x60xf32>
    %165 = arith.mulf %164, %163 : vector<8x60xf32>
    %cst_41 = arith.constant 5.000000e-01 : f32
    %166 = vector.broadcast %cst_41 : f32 to vector<8x60xf32>
    %167 = arith.addf %165, %166 : vector<8x60xf32>
    %168 = vector.extract_strided_slice %159 {offsets = [0, 60], sizes = [8, 20], strides = [1, 1]} : vector<8x80xf32> to vector<8x20xf32>
    %169 = math.tanh %168 : vector<8x20xf32>
    %170 = vector.extract_strided_slice %167 {offsets = [0, 0], sizes = [8, 20], strides = [1, 1]} : vector<8x60xf32> to vector<8x20xf32>
    %171 = vector.extract_strided_slice %167 {offsets = [0, 20], sizes = [8, 20], strides = [1, 1]} : vector<8x60xf32> to vector<8x20xf32>
    %172 = vector.extract_strided_slice %167 {offsets = [0, 40], sizes = [8, 20], strides = [1, 1]} : vector<8x60xf32> to vector<8x20xf32>
    %173 = arith.mulf %171, %154 : vector<8x20xf32>
    %174 = arith.mulf %170, %169 : vector<8x20xf32>
    %175 = arith.addf %173, %174 : vector<8x20xf32>
    %176 = math.tanh %175 : vector<8x20xf32>
    %177 = arith.mulf %172, %176 : vector<8x20xf32>
    %178 = vector.extract_strided_slice %30 {offsets = [0, 0], sizes = [8, 10], strides = [1, 1]} : vector<8x20xf32> to vector<8x10xf32>
    %179 = vector.extract_strided_slice %51 {offsets = [0, 0], sizes = [8, 10], strides = [1, 1]} : vector<8x20xf32> to vector<8x10xf32>
    %180 = vector.extract_strided_slice %72 {offsets = [0, 0], sizes = [8, 10], strides = [1, 1]} : vector<8x20xf32> to vector<8x10xf32>
    %181 = vector.extract_strided_slice %93 {offsets = [0, 0], sizes = [8, 10], strides = [1, 1]} : vector<8x20xf32> to vector<8x10xf32>
    %182 = vector.extract_strided_slice %114 {offsets = [0, 0], sizes = [8, 10], strides = [1, 1]} : vector<8x20xf32> to vector<8x10xf32>
    %183 = vector.extract_strided_slice %135 {offsets = [0, 0], sizes = [8, 10], strides = [1, 1]} : vector<8x20xf32> to vector<8x10xf32>
    %184 = vector.extract_strided_slice %156 {offsets = [0, 0], sizes = [8, 10], strides = [1, 1]} : vector<8x20xf32> to vector<8x10xf32>
    %185 = vector.extract_strided_slice %177 {offsets = [0, 0], sizes = [8, 10], strides = [1, 1]} : vector<8x20xf32> to vector<8x10xf32>
    %186 = tpu.concatenate %178, %179, %180, %181, %182, %183, %184, %185 in 0 : vector<8x10xf32>, vector<8x10xf32>, vector<8x10xf32>, vector<8x10xf32>, vector<8x10xf32>, vector<8x10xf32>, vector<8x10xf32>, vector<8x10xf32> -> vector<64x10xf32>
    %187 = vector.extract_strided_slice %177 {offsets = [0, 10], sizes = [8, 10], strides = [1, 1]} : vector<8x20xf32> to vector<8x10xf32>
    %188 = vector.extract_strided_slice %156 {offsets = [0, 10], sizes = [8, 10], strides = [1, 1]} : vector<8x20xf32> to vector<8x10xf32>
    %189 = vector.extract_strided_slice %135 {offsets = [0, 10], sizes = [8, 10], strides = [1, 1]} : vector<8x20xf32> to vector<8x10xf32>
    %190 = vector.extract_strided_slice %114 {offsets = [0, 10], sizes = [8, 10], strides = [1, 1]} : vector<8x20xf32> to vector<8x10xf32>
    %191 = vector.extract_strided_slice %93 {offsets = [0, 10], sizes = [8, 10], strides = [1, 1]} : vector<8x20xf32> to vector<8x10xf32>
    %192 = vector.extract_strided_slice %72 {offsets = [0, 10], sizes = [8, 10], strides = [1, 1]} : vector<8x20xf32> to vector<8x10xf32>
    %193 = vector.extract_strided_slice %51 {offsets = [0, 10], sizes = [8, 10], strides = [1, 1]} : vector<8x20xf32> to vector<8x10xf32>
    %194 = vector.extract_strided_slice %30 {offsets = [0, 10], sizes = [8, 10], strides = [1, 1]} : vector<8x20xf32> to vector<8x10xf32>
    %195 = tpu.concatenate %187, %188, %189, %190, %191, %192, %193, %194 in 0 : vector<8x10xf32>, vector<8x10xf32>, vector<8x10xf32>, vector<8x10xf32>, vector<8x10xf32>, vector<8x10xf32>, vector<8x10xf32>, vector<8x10xf32> -> vector<64x10xf32>
    %c0_42 = arith.constant 0 : index
    %c0_43 = arith.constant 0 : index
    %196 = vector.load %arg5[%c0_42, %c0_43] : memref<10x4xf32, #tpu.memory_space<vmem>>, vector<10x4xf32>
    %cst_44 = arith.constant dense<0.000000e+00> : vector<64x4xf32>
    %197 = tpu.matmul %186, %196, %cst_44 {dimension_numbers = #tpu.dot_dimension_numbers<[1], [0], [0], [1], [0, 0, 1, 1], [], []>} : vector<64x10xf32>, vector<10x4xf32>, vector<64x4xf32> -> vector<64x4xf32>
    %c0_45 = arith.constant 0 : index
    %c0_46 = arith.constant 0 : index
    %198 = vector.load %arg6[%c0_45, %c0_46] : memref<1x4xf32, #tpu.memory_space<vmem>>, vector<1x4xf32>
    %199 = vector.broadcast %198 : vector<1x4xf32> to vector<64x4xf32>
    %200 = arith.addf %197, %199 : vector<64x4xf32>
    %cst_47 = arith.constant dense<0xFF800000> : vector<64xf32>
    %201 = vector.multi_reduction <maximumf>, %200, %cst_47 [1] : vector<64x4xf32> to vector<64xf32>
    %202 = vector.shape_cast %201 : vector<64xf32> to vector<64x1xf32>
    %203 = vector.broadcast %202 : vector<64x1xf32> to vector<64x4xf32>
    %204 = arith.subf %200, %203 : vector<64x4xf32>
    %205 = math.exp %204 : vector<64x4xf32>
    %cst_48 = arith.constant dense<0.000000e+00> : vector<64xf32>
    %206 = vector.multi_reduction <add>, %205, %cst_48 [1] : vector<64x4xf32> to vector<64xf32>
    %207 = vector.shape_cast %206 : vector<64xf32> to vector<64x1xf32>
    %208 = math.log %207 : vector<64x1xf32>
    %209 = vector.broadcast %208 : vector<64x1xf32> to vector<64x4xf32>
    %210 = arith.subf %204, %209 : vector<64x4xf32>
    %211 = tpu.concatenate %186, %195, %210 in 1 : vector<64x10xf32>, vector<64x10xf32>, vector<64x4xf32> -> vector<64x24xf32>
    %c0_49 = arith.constant 0 : index
    %c0_50 = arith.constant 0 : index
    %c0_51 = arith.constant 0 : index
    %212 = vector.load %arg7[%c0_49, %c0_50, %c0_51] : memref<1x64x24xf32, #tpu.memory_space<vmem>>, vector<1x64x24xf32>
    %213 = vector.shape_cast %212 : vector<1x64x24xf32> to vector<64x24xf32>
    %214 = vector.shape_cast %211 : vector<64x24xf32> to vector<1x64x24xf32>
    tpu.vector_store %arg7[%c0_49, %c0_50, %c0_51], %214 {strides = array<i32>} : memref<1x64x24xf32, #tpu.memory_space<vmem>>, vector<1x64x24xf32>,
    return
  }
  func.func @transform_0(%arg0: i32) -> (i32, i32, i32) {
    %c0_i32 = arith.constant 0 : i32
    %c0_i32_0 = arith.constant 0 : i32
    %c0_i32_1 = arith.constant 0 : i32
    return %arg0, %c0_i32, %c0_i32_0 : i32, i32, i32
  }
  func.func @transform_1(%arg0: i32) -> (i32, i32) {
    %c0_i32 = arith.constant 0 : i32
    %c0_i32_0 = arith.constant 0 : i32
    %c0_i32_1 = arith.constant 0 : i32
    return %c0_i32, %c0_i32_0 : i32, i32
  }
  func.func @transform_2(%arg0: i32) -> (i32, i32) {
    %c0_i32 = arith.constant 0 : i32
    %c0_i32_0 = arith.constant 0 : i32
    %c0_i32_1 = arith.constant 0 : i32
    return %c0_i32, %c0_i32_0 : i32, i32
  }
  func.func @transform_3(%arg0: i32) -> (i32, i32) {
    %c0_i32 = arith.constant 0 : i32
    %c0_i32_0 = arith.constant 0 : i32
    %c0_i32_1 = arith.constant 0 : i32
    return %c0_i32, %c0_i32_0 : i32, i32
  }
  func.func @transform_4(%arg0: i32) -> (i32, i32) {
    %c0_i32 = arith.constant 0 : i32
    %c0_i32_0 = arith.constant 0 : i32
    %c0_i32_1 = arith.constant 0 : i32
    return %c0_i32, %c0_i32_0 : i32, i32
  }
  func.func @transform_5(%arg0: i32) -> (i32, i32) {
    %c0_i32 = arith.constant 0 : i32
    %c0_i32_0 = arith.constant 0 : i32
    %c0_i32_1 = arith.constant 0 : i32
    return %c0_i32, %c0_i32_0 : i32, i32
  }
  func.func @transform_6(%arg0: i32) -> (i32, i32, i32) {
    %c0_i32 = arith.constant 0 : i32
    %c0_i32_0 = arith.constant 0 : i32
    %c0_i32_1 = arith.constant 0 : i32
    return %arg0, %c0_i32, %c0_i32_0 : i32, i32, i32
  }
}

</mosaic_0001>

<bundles_post_ra>
// kernel: image_wise_forward.1
= control target key start
LH: loop header
LB: loop body
LE: loop exit
PB: predicated region body
PF: predicated region fallthrough
CT: control target
= control target key end

     0   :  { %s1978_s21 = smov 0   ;;  %s2359_s0 = inlined_call_operand.vmem [shape: f32[2,64,96], index: 0, kind: input, shape index: {}]   ;;  %s2360_s1 = inlined_call_operand.vmem [shape: f32[96,80], index: 1, kind: input, shape index: {}]   ;;  %s2361_s2 = inlined_call_operand.vmem [shape: f32[1,80], index: 2, kind: input, shape index: {}]   ;;  %s2362_s3 = inlined_call_operand.vmem [shape: f32[20,80], index: 3, kind: input, shape index: {}]   ;;  %s2363_s4 = inlined_call_operand.vmem [shape: f32[10,4], index: 4, kind: input, shape index: {}]   ;;  %s2364_s5 = inlined_call_operand.vmem [shape: f32[1,4], index: 5, kind: input, shape index: {}]   ;;  %s2365_s6 = inlined_call_operand.vmem [shape: f32[2,64,24], index: 6, kind: output, shape index: {}]  }
   0x1 LB: > { %s1546_s22 = sadd.s32 4294967295, %s1934_s21   ;;  %p1550_p0 = scmp.ge.s32.totalorder %s1934_s21, 1  ;;  %s1934_s21 = sphi %s1978_s21, %s16_s21  }
   0x2   : > { %p212_p1 = scmp.lt.s32.totalorder %s1934_s21, 3 }
   0x4   : > { %p213_p2 = pnand %p1550_p0, %p212_p1 }
   0x5   : > { %v260_v0 = vld [vmem:[%s2360_s1] sm:$0xff] (!%p213_p2)  ;;  %v261_v1 = vld [vmem:[%s2360_s1 + $0x8] sm:$0xff] (!%p213_p2)  ;;  %v262_v2 = vld [vmem:[%s2360_s1 + $0x10] sm:$0xff] (!%p213_p2)  ;;  %p242_p3 = scmp.lt.s32.totalorder (!%p213_p2), %s1546_s22, 1  ;;  %v1936_v5 = vmov (!%p213_p2), 0.0|0.0   ;;  %vm1937_vm0 = vmmov (!%p213_p2), 0  }
   0x6   : > { %216 = sbr.rel (%p213_p2) target bundleno = 6299 (0x189b), region = 44  ;;  %v1779_v3 = vpack.c.bf16 (!%p213_p2), %v261_v1, %v260_v0  ;;  %v263_v4 = vld [vmem:[%s2360_s1 + $0x18] sm:$0xff] (!%p213_p2)  ;;  %1803 = vmatprep.subr.bf16.mxu1 (!%p213_p2), %v1936_v5  ;;  %v264_v7 = vld [vmem:[%s2360_s1 + $0x20] sm:$0xff] (!%p213_p2)  ;;  %v265_v8 = vld [vmem:[%s2360_s1 + $0x28] sm:$0xff] (!%p213_p2)  ;;  %v1938_v9 = vmov (!%p213_p2), 0.0   ;;  %vm279_vm1 = vcmask (!%p213_p2), 785408  }
   0x7   : > { %v1783_v6 = vpack.c.bf16 (!%p213_p2), %v263_v4, %v262_v2  ;;  %1697 = vmatprep.mubr.msk.f32.mxu1 (!%p213_p2), %vm1937_vm0, %v1938_v9  ;;  %v409_v10 = vld [vmem:[%s2362_s3] sm:$0xff] (!%p213_p2)  ;;  %v410_v11 = vld [vmem:[%s2362_s3 + $0x8] sm:$0xff] (!%p213_p2)  ;;  %v1787_v12 = vpack.c.bf16 (!%p213_p2), %v265_v8, %v264_v7  ;;  %v266_v14 = vld [vmem:[%s2360_s1 + $0x30] sm:$0xff] (!%p213_p2)  ;;  %vm416_vm2 = vcmask (!%p213_p2), 1043456   ;;  %s1939_s13 = smov (!%p213_p2), 68   ;;  %s1940_s14 = smov (!%p213_p2), 20  }
   0x8   : > { %1780 = vmatprep.subr.bf16.mxu0 (!%p213_p2), %v1779_v3  ;;  %v2016_v13 = vpack.c.bf16 (!%p213_p2), %v410_v11, %v409_v10  ;;  %v267_v15 = vld [vmem:[%s2360_s1 + $0x38] sm:$0xff] (!%p213_p2)  ;;  %v2038_v17 = vld [vmem:[%s2362_s3 + $0x10] sm:$0xf] (!%p213_p2)  ;;  %v268_v19 = vld [vmem:[%s2360_s1 + $0x40] sm:$0xff] (!%p213_p2)  ;;  %s1941_s16 = smov (!%p213_p2), 88   ;;  %vm412_vm3 = vcmask (!%p213_p2), 162816  }
   0x9   : > { %1782 = vmatpush3.bf16.msra.mxu0 (!%p213_p2), %v1779_v3  ;;  %v1791_v18 = vpack.c.bf16 (!%p213_p2), %v267_v15, %v266_v14  ;;  %v269_v20 = vld [vmem:[%s2360_s1 + $0x48] sm:$0xff] (!%p213_p2)  ;;  %v270_v22 = vld [vmem:[%s2360_s1 + $0x50] sm:$0xff] (!%p213_p2)  ;;  %v271_v23 = vld [vmem:[%s2360_s1 + $0x58] sm:$0xff] (!%p213_p2)  ;;  %vm1203_vm4 = vcmask (!%p213_p2), 80896   ;;  %vm1220_vm5 = vcmask (!%p213_p2), 1041408   ;;  %vm1942_vm6 = vmmov (!%p213_p2), 1  }
   0xa   : > { %1784 = vmatprep.subr.bf16.mxu0 (!%p213_p2), %v1783_v6  ;;  %1805 = vmatpush3.bf16.msra.mxu1 (!%p213_p2), %v2016_v13  ;;  %v1795_v21 = vpack.c.bf16 (!%p213_p2), %v269_v20, %v268_v19  ;;  %v1799_v24 = vpack.c.bf16 (!%p213_p2), %v271_v23, %v270_v22  ;;  %v2068_v28 = vld [vmem:[%s2361_s2] ss:$0 sm:$0xff] (!%p213_p2)  ;;  %v1192_v4 = vld [vmem:[%s2363_s4 + $0x8] sm:$0x3] (!%p213_p2)  ;;  %vm1828_vm7 = vmpackc.low (!%p213_p2), %vm1220_vm5, %vm1942_vm6  ;;  %vm1329_vm8 = vcmask (!%p213_p2), 31744   ;;  %vm1482_vm9 = vcmask (!%p213_p2), 195584  }
   0xb   : > { %1695 = vmatprep.subr.mxu1 (!%p213_p2), %v1938_v9  ;;  %v1191_v3 = vld [vmem:[%s2363_s4] sm:$0xff] (!%p213_p2) }
   0xd   : > { %s2367_s22 = smov (!%p242_p3, %s1546_s22), 1  ;;  %1786 = vmatpush3.bf16.msra.mxu0 %v1783_v6  ;;  %v1827_v6 = vpack.c.bf16 %v1192_v4, %v1191_v3 }
   0xe   : > { %s1591_s15 = sshll.u32 %s2367_s22, 6  ;;  %1788 = vmatprep.subr.bf16.mxu0 %v1787_v12  ;;  %1696 = vmatpush3.msk.msra.mxu1 %vm416_vm2, %v2038_v17 }
   0xf   : > { %s2023_s18 = scalar_lea.vmem %s2359_s0, %s1591_s15  ;;  %1698 = vmatmul.mubr.f32.vlgmr.msra.gmra.mrb[0].mxu1 %v1938_v9  ;;  %1806 = vmatprep.subr.bf16.mxu1 %v1936_v5  ;;  %s2302_s27 = scalar_lea.vmem %s2365_s6, %s1591_s15 }
  0x10   : > { %v252_v16 = vld [vmem:[%s2023_s18] sm:$0xff]  ;;  %1808 = vmatpush3.bf16.msra.mxu1 %v2016_v13  ;;  %1706 = vmatprep.mubr.msk.f32.mxu1 %vm1937_vm0, %v1938_v9  ;;  %v253_v25 = vld [vmem:[%s2023_s18 + $0x8] sm:$0xff]  ;;  %v254_v43 = vld [vmem:[%s2023_s18 + $0x10] sm:$0xff] }
  0x11   : > { %1679 = vmatprep.mubr.msk.f32.mxu0 %vm279_vm1, %v252_v16  ;;  %1790 = vmatpush3.bf16.msra.mxu0 %v1787_v12  ;;  %v255_v44 = vld [vmem:[%s2023_s18 + $0x18] sm:$0xff]  ;;  %v256_v45 = vld [vmem:[%s2023_s18 + $0x20] sm:$0xff]  ;;  %v257_v46 = vld [vmem:[%s2023_s18 + $0x28] sm:$0xff] }
  0x12   : > { %1792 = vmatprep.subr.bf16.mxu0 %v1791_v18  ;;  %1704 = vmatprep.subr.mxu1 %v1938_v9  ;;  %v258_v47 = vld [vmem:[%s2023_s18 + $0x30] sm:$0xff]  ;;  %v259_v48 = vld [vmem:[%s2023_s18 + $0x38] sm:$0xff] }
  0x14   : > { %1705 = vmatpush3.msk.msra.mxu1 %vm416_vm2, %v2038_v17 }
  0x15   : > { %1794 = vmatpush3.bf16.msra.mxu0 %v1791_v18  ;;  %1809 = vmatprep.subr.bf16.mxu1 %v1936_v5 }
  0x16   : > { %1796 = vmatprep.subr.bf16.mxu0 %v1795_v21 }
  0x19   : > { %1798 = vmatpush3.bf16.msra.mxu0 %v1795_v21 }
  0x1a   : > { %1800 = vmatprep.subr.bf16.mxu0 %v1799_v24 }
  0x1d   : > { %1802 = vmatpush3.bf16.msra.mxu0 %v1799_v24 }
  0x1e   : > { %1829 = vmatprep.subr.msk.bf16.mxu0 %vm1828_vm7, %v1827_v6 }
  0x20   : > { %1680 = vmatmul.mubr.msk.f32.vlgmr.msra.gmra.mrb[0].mxu0 %vm279_vm1, %v253_v25 }
  0x21   : > { %1682 = vmatprep.mubr.msk.f32.mxu0 %vm279_vm1, %v254_v43  ;;  %1832 = vmatpush3.bf16.msk.msra.mxu0 %vm1828_vm7, %v1827_v6 }
  0x24   : > { %1683 = vmatmul.mubr.msk.f32.gmra.mrb[2].mxu0 %vm279_vm1, %v255_v44 }
  0x25   : > { %1685 = vmatprep.mubr.msk.f32.mxu0 %vm279_vm1, %v256_v45 }
  0x28   : > { %1686 = vmatmul.mubr.msk.f32.gmra.mrb[4].mxu0 %vm279_vm1, %v257_v46 }
  0x29   : > { %1688 = vmatprep.mubr.msk.f32.mxu0 %vm279_vm1, %v258_v47 }
  0x2c   : > { %1689 = vmatmul.mubr.msk.f32.gmra.mrb[6].mxu0 %vm279_vm1, %v259_v48 }
  0xe2   : > { %v486_v26 = vpop.f32.mrb[0].mxu1 }
  0xe3   : > { %v1699_v27 = vpop.f32.mrb[1].mxu1 }
  0xf3   : > { %v1681_v29 = vpop.f32.mrb[0].mxu0 }
  0xf4   : > { %v370_v30 = vpop.f32.mrb[1].mxu0  ;;  %v376_v53 = vadd.f32 %v1681_v29, %v2068_v28 }
  0xf5   : > { %v371_v31 = vadd.f32 %v2068_v28, %v370_v30 }
  0xf7   : > { %v487_v32 = vadd.f32 %v486_v26, %v371_v31  ;;  %v1684_v8 = vpop.f32.mrb[2].mxu0 }
  0xf8   : > { %v380_v10 = vpop.f32.mrb[3].mxu0 }
  0xf9   : > { %1848 = vtanh.f32 %v487_v32  ;;  %v490_v34 = vmul.f32 0.5, %v487_v32  ;;  %v381_v20 = vadd.f32 %v2068_v28, %v380_v10 }
  0xfb   : > { %1850 = vtanh.f32 %v490_v34  ;;  %v2110_v11 = vpop.f32.mrb[4].mxu0 }
  0xfc   : > { %v2112_v12 = vpop.f32.mrb[5].mxu0 }
  0xff   : > { %v2114_v14 = vpop.f32.mrb[6].mxu0 }
 0x100   : > { %v2116_v15 = vpop.f32.mrb[7].mxu0 }
 0x103   : > { %v1849_v33 = vpop.eup %1848 }
 0x104   : > { %497 = vrot.lane.b32.xlu0 %v1849_v33, %s1939_s13 }
 0x105   : > { %v1851_v35 = vpop.eup %1850 }
 0x106   : > { %v492_v36 = vmul.f32 0.5, %v1851_v35 }
 0x108   : > { %v493_v37 = vadd.f32 0.5, %v492_v36 }
 0x10a   : > { %v495_v40 = vmul.f32 0.0, %v493_v37 }
 0x176   : > { %v498_v38 = vpop.permute.xlu0 %497 }
 0x177   : > { %v500_v39 = vmul.f32 %v498_v38, %v493_v37 }
 0x179   : > { %502 = vrot.lane.b32.xlu0 %v500_v39, %s1940_s14 }
 0x1eb   : > { %v503_v41 = vpop.permute.xlu0 %502 }
 0x1ec   : > { %v505_v42 = vadd.f32 %v503_v41, %v495_v40  ;;  %v386_v41 = vadd.f32 %v1684_v8, %v2068_v28 }
 0x1ee   : > { %1852 = vtanh.f32 %v505_v42 }
 0x1f8   : > { %v1853_v49 = vpop.eup %1852 }
 0x1f9   : > { %508 = vrot.lane.b32.xlu1 %v1853_v49, %s1940_s14 }
 0x26b   : > { %v509_v50 = vpop.permute.xlu1 %508 }
 0x26c   : > { %v511_v51 = vmul.f32 %v509_v50, %v493_v37 }
 0x26e   : > { %513 = vrot.lane.b32.xlu1 %v511_v51, %s1941_s16 }
 0x2e0   : > { %v2087_v52 = vpop.permute.xlu1 %513 }
 0x2e1   : > { %1707 = vmatmul.mubr.msk.f32.vlgmr.msra.gmra.mrb[2].mxu1 %vm412_vm3, %v2087_v52  ;;  %1767 = vmatprep.mubr.msk.f32.mxu0 %vm1203_vm4, %v2087_v52 }
 0x2e2   : > { %1811 = vmatpush3.bf16.msra.mxu1 %v2016_v13  ;;  %1715 = vmatprep.mubr.msk.f32.mxu1 %vm1937_vm0, %v1938_v9 }
 0x2e3   : > { %1713 = vmatprep.subr.mxu1 %v1938_v9 }
 0x2e6   : > { %1714 = vmatpush3.msk.msra.mxu1 %vm416_vm2, %v2038_v17 }
 0x2e7   : > { %1812 = vmatprep.subr.bf16.mxu1 %v1936_v5 }
 0x3b4   : > { %v583_v54 = vpop.f32.mrb[2].mxu1 }
 0x3b5   : > { %v584_v55 = vadd.f32 %v583_v54, %v376_v53  ;;  %v1708_v56 = vpop.f32.mrb[3].mxu1 }
 0x3b7   : > { %1854 = vtanh.f32 %v584_v55  ;;  %v587_v58 = vmul.f32 0.5, %v584_v55 }
 0x3b9   : > { %1856 = vtanh.f32 %v587_v58 }
 0x3c1   : > { %v1855_v57 = vpop.eup %1854 }
 0x3c2   : > { %594 = vrot.lane.b32.xlu0 %v1855_v57, %s1939_s13 }
 0x3c3   : > { %v1857_v59 = vpop.eup %1856 }
 0x3c4   : > { %v589_v60 = vmul.f32 0.5, %v1857_v59 }
 0x3c6   : > { %v590_v61 = vadd.f32 0.5, %v589_v60  ;;  %v391_v60 = vadd.f32 %v2068_v28, %v2112_v12 }
 0x3c8   : > { %v592_v0 = vmul.f32 %v590_v61, %v505_v42 }
 0x434   : > { %v595_v62 = vpop.permute.xlu0 %594 }
 0x435   : > { %v597_v63 = vmul.f32 %v595_v62, %v590_v61 }
 0x437   : > { %599 = vrot.lane.b32.xlu1 %v597_v63, %s1940_s14 }
 0x4a9   : > { %v600_v1 = vpop.permute.xlu1 %599 }
 0x4aa   : > { %v602_v2 = vadd.f32 %v600_v1, %v592_v0 }
 0x4ac   : > { %1858 = vtanh.f32 %v602_v2 }
 0x4b6   : > { %v1859_v7 = vpop.eup %1858 }
 0x4b7   : > { %605 = vrot.lane.b32.xlu0 %v1859_v7, %s1940_s14 }
 0x529   : > { %v606_v16 = vpop.permute.xlu0 %605 }
 0x52a   : > { %v608_v18 = vmul.f32 %v606_v16, %v590_v61 }
 0x52c   : > { %610 = vrot.lane.b32.xlu1 %v608_v18, %s1941_s16 }
 0x59e   : > { %v2119_v19 = vpop.permute.xlu1 %610 }
 0x59f   : > { %1716 = vmatmul.mubr.msk.f32.vlgmr.msra.gmra.mrb[4].mxu1 %vm412_vm3, %v2119_v19  ;;  %1768 = vmatmul.mubr.msk.f32.vlgmr.msra.gmra.mrb[8].mxu0 %vm1203_vm4, %v2119_v19 }
 0x5a0   : > { %1814 = vmatpush3.bf16.msra.mxu1 %v2016_v13  ;;  %1724 = vmatprep.mubr.msk.f32.mxu1 %vm1937_vm0, %v1938_v9 }
 0x5a1   : > { %1722 = vmatprep.subr.mxu1 %v1938_v9 }
 0x5a4   : > { %1723 = vmatpush3.msk.msra.mxu1 %vm416_vm2, %v2038_v17 }
 0x5a5   : > { %1815 = vmatprep.subr.bf16.mxu1 %v1936_v5 }
 0x672   : > { %v680_v21 = vpop.f32.mrb[4].mxu1  ;;  %v2133_v22 = vpop.f32.mrb[8].mxu0 }
 0x673   : > { %v681_v23 = vadd.f32 %v680_v21, %v381_v20  ;;  %v1717_v24 = vpop.f32.mrb[5].mxu1  ;;  %v2135_v25 = vpop.f32.mrb[9].mxu0 }
 0x675   : > { %1860 = vtanh.f32 %v681_v23  ;;  %v684_v27 = vmul.f32 0.5, %v681_v23 }
 0x677   : > { %1862 = vtanh.f32 %v684_v27 }
 0x67f   : > { %v1861_v26 = vpop.eup %1860 }
 0x680   : > { %691 = vrot.lane.b32.xlu0 %v1861_v26, %s1939_s13  ;;  %v396_v26 = vadd.f32 %v2110_v11, %v2068_v28 }
 0x681   : > { %v1863_v29 = vpop.eup %1862 }
 0x682   : > { %v686_v30 = vmul.f32 0.5, %v1863_v29 }
 0x684   : > { %v687_v31 = vadd.f32 0.5, %v686_v30 }
 0x686   : > { %v689_v34 = vmul.f32 %v687_v31, %v602_v2 }
 0x6f2   : > { %v692_v32 = vpop.permute.xlu0 %691 }
 0x6f3   : > { %v694_v33 = vmul.f32 %v692_v32, %v687_v31 }
 0x6f5   : > { %696 = vrot.lane.b32.xlu1 %v694_v33, %s1940_s14 }
 0x767   : > { %v697_v35 = vpop.permute.xlu1 %696 }
 0x768   : > { %v699_v36 = vadd.f32 %v697_v35, %v689_v34 }
 0x76a   : > { %1864 = vtanh.f32 %v699_v36 }
 0x774   : > { %v1865_v37 = vpop.eup %1864 }
 0x775   : > { %702 = vrot.lane.b32.xlu0 %v1865_v37, %s1940_s14 }
 0x7e7   : > { %v703_v38 = vpop.permute.xlu0 %702 }
 0x7e8   : > { %v705_v39 = vmul.f32 %v703_v38, %v687_v31 }
 0x7ea   : > { %707 = vrot.lane.b32.xlu1 %v705_v39, %s1941_s16 }
 0x85c   : > { %v2141_v40 = vpop.permute.xlu1 %707 }
 0x85d   : > { %1725 = vmatmul.mubr.msk.f32.vlgmr.msra.gmra.mrb[6].mxu1 %vm412_vm3, %v2141_v40  ;;  %1770 = vmatprep.mubr.msk.f32.mxu0 %vm1203_vm4, %v2141_v40 }
 0x85e   : > { %1817 = vmatpush3.bf16.msra.mxu1 %v2016_v13  ;;  %1733 = vmatprep.mubr.msk.f32.mxu1 %vm1937_vm0, %v1938_v9 }
 0x85f   : > { %1731 = vmatprep.subr.mxu1 %v1938_v9 }
 0x862   : > { %1732 = vmatpush3.msk.msra.mxu1 %vm416_vm2, %v2038_v17 }
 0x863   : > { %1818 = vmatprep.subr.bf16.mxu1 %v1936_v5 }
 0x930   : > { %v777_v42 = vpop.f32.mrb[6].mxu1 }
 0x931   : > { %v778_v43 = vadd.f32 %v777_v42, %v386_v41  ;;  %v1726_v44 = vpop.f32.mrb[7].mxu1 }
 0x932   : > { %v401_v44 = vadd.f32 %v2068_v28, %v2116_v15 }
 0x933   : > { %1866 = vtanh.f32 %v778_v43  ;;  %v781_v46 = vmul.f32 0.5, %v778_v43 }
 0x935   : > { %1868 = vtanh.f32 %v781_v46 }
 0x93d   : > { %v1867_v45 = vpop.eup %1866 }
 0x93e   : > { %788 = vrot.lane.b32.xlu0 %v1867_v45, %s1939_s13 }
 0x93f   : > { %v1869_v47 = vpop.eup %1868 }
 0x940   : > { %v783_v48 = vmul.f32 0.5, %v1869_v47 }
 0x942   : > { %v784_v49 = vadd.f32 0.5, %v783_v48 }
 0x944   : > { %v786_v53 = vmul.f32 %v784_v49, %v699_v36 }
 0x9b0   : > { %v789_v50 = vpop.permute.xlu0 %788 }
 0x9b1   : > { %v791_v51 = vmul.f32 %v789_v50, %v784_v49 }
 0x9b3   : > { %793 = vrot.lane.b32.xlu1 %v791_v51, %s1940_s14 }
 0xa25   : > { %v794_v54 = vpop.permute.xlu1 %793 }
 0xa26   : > { %v796_v55 = vadd.f32 %v794_v54, %v786_v53 }
 0xa28   : > { %1870 = vtanh.f32 %v796_v55 }
 0xa32   : > { %v1871_v56 = vpop.eup %1870 }
 0xa33   : > { %799 = vrot.lane.b32.xlu0 %v1871_v56, %s1940_s14 }
 0xaa5   : > { %v800_v57 = vpop.permute.xlu0 %799 }
 0xaa6   : > { %v802_v58 = vmul.f32 %v800_v57, %v784_v49 }
 0xaa8   : > { %804 = vrot.lane.b32.xlu1 %v802_v58, %s1941_s16 }
 0xb1a   : > { %v2159_v59 = vpop.permute.xlu1 %804 }
 0xb1b   : > { %1734 = vmatmul.mubr.msk.f32.vlgmr.msra.gmra.mrb[8].mxu1 %vm412_vm3, %v2159_v59  ;;  %1771 = vmatmul.mubr.msk.f32.gmra.mrb[10].mxu0 %vm1203_vm4, %v2159_v59 }
 0xb1c   : > { %1820 = vmatpush3.bf16.msra.mxu1 %v2016_v13  ;;  %1742 = vmatprep.mubr.msk.f32.mxu1 %vm1937_vm0, %v1938_v9 }
 0xb1d   : > { %1740 = vmatprep.subr.mxu1 %v1938_v9 }
 0xb20   : > { %1741 = vmatpush3.msk.msra.mxu1 %vm416_vm2, %v2038_v17 }
 0xb21   : > { %1821 = vmatprep.subr.bf16.mxu1 %v1936_v5 }
 0xbee   : > { %v874_v61 = vpop.f32.mrb[8].mxu1  ;;  %v2174_v62 = vpop.f32.mrb[10].mxu0 }
 0xbef   : > { %v875_v63 = vadd.f32 %v874_v61, %v391_v60  ;;  %v1735_v0 = vpop.f32.mrb[9].mxu1  ;;  %v2176_v1 = vpop.f32.mrb[11].mxu0 }
 0xbf1   : > { %1872 = vtanh.f32 %v875_v63  ;;  %v878_v3 = vmul.f32 0.5, %v875_v63  ;;  %v406_v63 = vadd.f32 %v2114_v14, %v2068_v28  ;;  %v1579_v14 = vld [vmem:[%s2364_s5] ss:$0 sm:$0xff] }
 0xbf3   : > { %1874 = vtanh.f32 %v878_v3 }
 0xbfb   : > { %v1873_v2 = vpop.eup %1872 }
 0xbfc   : > { %885 = vrot.lane.b32.xlu0 %v1873_v2, %s1939_s13 }
 0xbfd   : > { %v1875_v4 = vpop.eup %1874 }
 0xbfe   : > { %v880_v6 = vmul.f32 0.5, %v1875_v4 }
 0xc00   : > { %v881_v7 = vadd.f32 0.5, %v880_v6 }
 0xc02   : > { %v883_v12 = vmul.f32 %v881_v7, %v796_v55 }
 0xc6e   : > { %v886_v8 = vpop.permute.xlu0 %885 }
 0xc6f   : > { %v888_v10 = vmul.f32 %v886_v8, %v881_v7 }
 0xc71   : > { %890 = vrot.lane.b32.xlu1 %v888_v10, %s1940_s14 }
 0xce3   : > { %v891_v16 = vpop.permute.xlu1 %890 }
 0xce4   : > { %v893_v18 = vadd.f32 %v891_v16, %v883_v12 }
 0xce6   : > { %1876 = vtanh.f32 %v893_v18 }
 0xcf0   : > { %v1877_v20 = vpop.eup %1876 }
 0xcf1   : > { %896 = vrot.lane.b32.xlu0 %v1877_v20, %s1940_s14 }
 0xd63   : > { %v897_v21 = vpop.permute.xlu0 %896 }
 0xd64   : > { %v899_v23 = vmul.f32 %v897_v21, %v881_v7 }
 0xd66   : > { %901 = vrot.lane.b32.xlu1 %v899_v23, %s1941_s16  ;;  %v1291_v23 = vadd.f32 %v1579_v14, %v2135_v25 }
 0xdd8   : > { %v2182_v24 = vpop.permute.xlu1 %901 }
 0xdd9   : > { %1743 = vmatmul.mubr.msk.f32.vlgmr.msra.gmra.mrb[10].mxu1 %vm412_vm3, %v2182_v24  ;;  %1773 = vmatprep.mubr.msk.f32.mxu0 %vm1203_vm4, %v2182_v24 }
 0xdda   : > { %1823 = vmatpush3.bf16.msra.mxu1 %v2016_v13  ;;  %1751 = vmatprep.mubr.msk.f32.mxu1 %vm1937_vm0, %v1938_v9 }
 0xddb   : > { %1749 = vmatprep.subr.mxu1 %v1938_v9 }
 0xdde   : > { %1750 = vmatpush3.msk.msra.mxu1 %vm416_vm2, %v2038_v17 }
 0xddf   : > { %1824 = vmatprep.subr.bf16.mxu1 %v1936_v5 }
 0xeac   : > { %v971_v27 = vpop.f32.mrb[10].mxu1 }
 0xead   : > { %v972_v29 = vadd.f32 %v971_v27, %v396_v26  ;;  %v1744_v30 = vpop.f32.mrb[11].mxu1  ;;  %v1301_v26 = vadd.f32 %v1579_v14, %v2176_v1  ;;  %v1330_v27 = vsel %vm1329_vm8, %v1291_v23, -inf  ;;  %v1296_v1 = vadd.f32 %v2133_v22, %v1579_v14 }
 0xeaf   : > { %1878 = vtanh.f32 %v972_v29  ;;  %v975_v32 = vmul.f32 0.5, %v972_v29  ;;  %v1306_v29 = vadd.f32 %v2174_v62, %v1579_v14  ;;  %v1336_v30 = vsel %vm1329_vm8, %v1301_v26, -inf }
 0xeb0   : > { %v1333_v62 = vsel %vm1329_vm8, %v1296_v1, -inf }
 0xeb1   : > { %1880 = vtanh.f32 %v975_v32  ;;  %v1339_v32 = vsel %vm1329_vm8, %v1306_v29, -inf }
 0xeb9   : > { %v1879_v31 = vpop.eup %1878 }
 0xeba   : > { %982 = vrot.lane.b32.xlu0 %v1879_v31, %s1939_s13 }
 0xebb   : > { %v1881_v33 = vpop.eup %1880 }
 0xebc   : > { %v977_v34 = vmul.f32 0.5, %v1881_v33 }
 0xebe   : > { %v978_v35 = vadd.f32 0.5, %v977_v34 }
 0xec0   : > { %v980_v5 = vmul.f32 %v978_v35, %v893_v18 }
 0xf2c   : > { %v983_v36 = vpop.permute.xlu0 %982 }
 0xf2d   : > { %v985_v37 = vmul.f32 %v983_v36, %v978_v35 }
 0xf2f   : > { %987 = vrot.lane.b32.xlu1 %v985_v37, %s1940_s14 }
 0xfa1   : > { %v988_v38 = vpop.permute.xlu1 %987 }
 0xfa2   : > { %v990_v39 = vadd.f32 %v988_v38, %v980_v5 }
 0xfa4   : > { %1882 = vtanh.f32 %v990_v39 }
 0xfae   : > { %v1883_v11 = vpop.eup %1882 }
 0xfaf   : > { %993 = vrot.lane.b32.xlu0 %v1883_v11, %s1940_s14 }
0x1021   : > { %v994_v41 = vpop.permute.xlu0 %993 }
0x1022   : > { %v996_v42 = vmul.f32 %v994_v41, %v978_v35 }
0x1024   : > { %998 = vrot.lane.b32.xlu1 %v996_v42, %s1941_s16 }
0x1096   : > { %v2201_v43 = vpop.permute.xlu1 %998 }
0x1097   : > { %1752 = vmatmul.mubr.msk.f32.vlgmr.msra.gmra.mrb[12].mxu1 %vm412_vm3, %v2201_v43  ;;  %1774 = vmatmul.mubr.msk.f32.gmra.mrb[12].mxu0 %vm1203_vm4, %v2201_v43 }
0x1098   : > { %1826 = vmatpush3.bf16.msra.mxu1 %v2016_v13  ;;  %1760 = vmatprep.mubr.msk.f32.mxu1 %vm1937_vm0, %v1938_v9 }
0x1099   : > { %1758 = vmatprep.subr.mxu1 %v1938_v9 }
0x109c   : > { %1759 = vmatpush3.msk.msra.mxu1 %vm416_vm2, %v2038_v17 }
0x116a   : > { %v1068_v45 = vpop.f32.mrb[12].mxu1  ;;  %v1775_v46 = vpop.f32.mrb[12].mxu0 }
0x116b   : > { %v1069_v47 = vadd.f32 %v1068_v45, %v401_v44  ;;  %v1753_v48 = vpop.f32.mrb[13].mxu1  ;;  %v2215_v49 = vpop.f32.mrb[13].mxu0  ;;  %v1316_v31 = vadd.f32 %v1775_v46, %v1579_v14 }
0x116c   : > { %v1311_v35 = vadd.f32 %v1579_v14, %v2215_v49 }
0x116d   : > { %1884 = vtanh.f32 %v1069_v47  ;;  %v1072_v13 = vmul.f32 0.5, %v1069_v47  ;;  %v1345_v33 = vsel %vm1329_vm8, %v1316_v31, -inf }
0x116e   : > { %v1342_v36 = vsel %vm1329_vm8, %v1311_v35, -inf }
0x116f   : > { %1886 = vtanh.f32 %v1072_v13 }
0x1177   : > { %v1885_v50 = vpop.eup %1884 }
0x1178   : > { %1079 = vrot.lane.b32.xlu0 %v1885_v50, %s1939_s13 }
0x1179   : > { %v1887_v51 = vpop.eup %1886 }
0x117a   : > { %v1074_v9 = vmul.f32 0.5, %v1887_v51 }
0x117c   : > { %v1075_v53 = vadd.f32 0.5, %v1074_v9 }
0x117e   : > { %v1077_v15 = vmul.f32 %v1075_v53, %v990_v39 }
0x11ea   : > { %v1080_v54 = vpop.permute.xlu0 %1079 }
0x11eb   : > { %v1082_v17 = vmul.f32 %v1080_v54, %v1075_v53 }
0x11ed   : > { %1084 = vrot.lane.b32.xlu1 %v1082_v17, %s1940_s14 }
0x125f   : > { %v1085_v55 = vpop.permute.xlu1 %1084 }
0x1260   : > { %v1087_v56 = vadd.f32 %v1085_v55, %v1077_v15 }
0x1262   : > { %1888 = vtanh.f32 %v1087_v56 }
0x126c   : > { %v1889_v57 = vpop.eup %1888 }
0x126d   : > { %1090 = vrot.lane.b32.xlu0 %v1889_v57, %s1940_s14 }
0x12df   : > { %v1091_v58 = vpop.permute.xlu0 %1090 }
0x12e0   : > { %v1093_v60 = vmul.f32 %v1091_v58, %v1075_v53 }
0x12e2   : > { %1095 = vrot.lane.b32.xlu1 %v1093_v60, %s1941_s16 }
0x1354   : > { %v2221_v61 = vpop.permute.xlu1 %1095 }
0x1355   : > { %1761 = vmatmul.mubr.msk.f32.vlgmr.msra.gmra.mrb[14].mxu1 %vm412_vm3, %v2221_v61  ;;  %1776 = vmatprep.mubr.msk.f32.mxu0 %vm1203_vm4, %v2221_v61 }
0x1428   : > { %v1165_v0 = vpop.f32.mrb[14].mxu1 }
0x1429   : > { %v1166_v2 = vadd.f32 %v1165_v0, %v406_v63  ;;  %v1762_v3 = vpop.f32.mrb[15].mxu1 }
0x142b   : > { %1890 = vtanh.f32 %v1166_v2  ;;  %v1169_v6 = vmul.f32 0.5, %v1166_v2 }
0x142d   : > { %1892 = vtanh.f32 %v1169_v6 }
0x1435   : > { %v1891_v4 = vpop.eup %1890 }
0x1436   : > { %1176 = vrot.lane.b32.xlu0 %v1891_v4, %s1939_s13 }
0x1437   : > { %v1893_v7 = vpop.eup %1892 }
0x1438   : > { %v1171_v8 = vmul.f32 0.5, %v1893_v7 }
0x143a   : > { %v1172_v10 = vadd.f32 0.5, %v1171_v8 }
0x143c   : > { %v1174_v18 = vmul.f32 %v1172_v10, %v1087_v56 }
0x14a8   : > { %v1177_v12 = vpop.permute.xlu0 %1176 }
0x14a9   : > { %v1179_v16 = vmul.f32 %v1177_v12, %v1172_v10 }
0x14ab   : > { %1181 = vrot.lane.b32.xlu1 %v1179_v16, %s1940_s14 }
0x151d   : > { %v1182_v20 = vpop.permute.xlu1 %1181 }
0x151e   : > { %v1184_v21 = vadd.f32 %v1182_v20, %v1174_v18 }
0x1520   : > { %1894 = vtanh.f32 %v1184_v21 }
0x152a   : > { %v1895_v28 = vpop.eup %1894 }
0x152b   : > { %1187 = vrot.lane.b32.xlu0 %v1895_v28, %s1940_s14 }
0x154a   : > { %1331 = vmax.xlane.f32.xlu0 %v1330_v27 }
0x154e   : > { %1337 = vmax.xlane.f32.xlu0 %v1336_v30 }
0x1552   : > { %1340 = vmax.xlane.f32.xlu0 %v1339_v32 }
0x1556   : > { %1346 = vmax.xlane.f32.xlu0 %v1345_v33 }
0x159d   : > { %v1188_v34 = vpop.permute.xlu0 %1187 }
0x159e   : > { %v1190_v25 = vmul.f32 %v1188_v34, %v1172_v10 }
0x15a0   : > { %1201 = vrot.lane.b32.xlu1 %v1190_v25, %s1941_s16 }
0x15c4   : > { %1334 = vmax.xlane.f32.xlu1 %v1333_v62 }
0x15c8   : > { %1343 = vmax.xlane.f32.xlu1 %v1342_v36 }
0x15d7   : > { %v1332_v5 = vpop.xlane.xlu0 %1331 }
0x15d8   : > { %v2253_v22 = vsub.f32 %v1291_v23, %v1332_v5 }
0x15da   : > { %v1362_v45 = vmul.f32 1.442695, %v2253_v22 }
0x15db   : > { %v1338_v38 = vpop.xlane.xlu0 %1337 }
0x15dc   : > { %v2259_v46 = vsub.f32 %v1301_v26, %v1338_v38 }
0x15de   : > { %v1366_v13 = vmul.f32 1.442695, %v2259_v46 }
0x15df   : > { %v1341_v11 = vpop.xlane.xlu0 %1340 }
0x15e0   : > { %v2255_v42 = vsub.f32 %v1306_v29, %v1341_v11 }
0x15e2   : > { %v1368_v49 = vmul.f32 1.442695, %v2255_v42 }
0x15e3   : > { %v1347_v47 = vpop.xlane.xlu0 %1346 }
0x15e4   : > { %v2262_v50 = vsub.f32 %v1316_v31, %v1347_v47 }
0x15e6   : > { %v1372_v9 = vmul.f32 1.442695, %v2262_v50 }
0x1612   : > { %v2247_v37 = vpop.permute.xlu1 %1201 }
0x1613   : > { %1777 = vmatmul.mubr.msk.f32.gmra.mrb[14].mxu0 %vm1203_vm4, %v2247_v37 }
0x1651   : > { %v1335_v39 = vpop.xlane.xlu1 %1334 }
0x1652   : > { %v2251_v41 = vsub.f32 %v1296_v1, %v1335_v39 }
0x1654   : > { %v1364_v44 = vmul.f32 1.442695, %v2251_v41 }
0x1655   : > { %v1344_v48 = vpop.xlane.xlu1 %1343 }
0x1656   : > { %1896 = vpow2.f32 %v1364_v44  ;;  %v2265_v51 = vsub.f32 %v1311_v35, %v1344_v48 }
0x1657   : > { %1898 = vpow2.f32 %v1362_v45 }
0x1658   : > { %1900 = vpow2.f32 %v1368_v49  ;;  %v1370_v53 = vmul.f32 1.442695, %v2265_v51 }
0x1659   : > { %1902 = vpow2.f32 %v1366_v13 }
0x165a   : > { %1904 = vpow2.f32 %v1372_v9 }
0x165b   : > { %1906 = vpow2.f32 %v1370_v53 }
0x1660   : > { %v1897_v57 = vpop.eup %1896 }
0x1661   : > { %v1899_v60 = vpop.eup %1898  ;;  %v1381_v63 = vsel %vm1329_vm8, %v1897_v57, 0.0 }
0x1662   : > { %v1901_v0 = vpop.eup %1900  ;;  %v1378_v2 = vsel %vm1329_vm8, %v1899_v60, 0.0  ;;  %v1468_v60 = vsel %vm1203_vm4, %v2141_v40, %v2201_v43 }
0x1663   : > { %v1903_v3 = vpop.eup %1902  ;;  %v1387_v4 = vsel %vm1329_vm8, %v1901_v0, 0.0 }
0x1664   : > { %v1905_v6 = vpop.eup %1904  ;;  %v1384_v7 = vsel %vm1329_vm8, %v1903_v3, 0.0 }
0x1665   : > { %v1907_v8 = vpop.eup %1906  ;;  %v1393_v10 = vsel %vm1329_vm8, %v1905_v6, 0.0 }
0x1666   : > { %v1390_v12 = vsel %vm1329_vm8, %v1907_v8, 0.0 }
0x16e6   : > { %v1778_v54 = vpop.f32.mrb[14].mxu0 }
0x16e7   : > { %v1326_v17 = vadd.f32 %v1778_v54, %v1579_v14  ;;  %v1320_v15 = vpop.f32.mrb[15].mxu0 }
0x16e8   : > { %v1321_v55 = vadd.f32 %v1579_v14, %v1320_v15 }
0x16e9   : > { %v1351_v56 = vsel %vm1329_vm8, %v1326_v17, -inf }
0x16ea   : > { %1352 = vmax.xlane.f32.xlu0 %v1351_v56  ;;  %v1348_v58 = vsel %vm1329_vm8, %v1321_v55, -inf  ;;  %v1470_v56 = vsel %vm1203_vm4, %v2182_v24, %v2159_v59 }
0x16eb   : > { %1349 = vmax.xlane.f32.xlu1 %v1348_v58 }
0x16ee   : > { %1382 = vadd.xlane.f32.xlu0 %v1381_v63 }
0x16ef   : > { %1379 = vadd.xlane.f32.xlu1 %v1378_v2 }
0x16f2   : > { %1388 = vadd.xlane.f32.xlu0 %v1387_v4 }
0x16f3   : > { %1385 = vadd.xlane.f32.xlu1 %v1384_v7  ;;  %v1469_v7 = vsel %vm1203_vm4, %v2159_v59, %v2182_v24 }
0x16f6   : > { %1394 = vadd.xlane.f32.xlu0 %v1393_v10 }
0x16f7   : > { %1391 = vadd.xlane.f32.xlu1 %v1390_v12 }
0x1777   : > { %v1353_v16 = vpop.xlane.xlu0 %1352 }
0x1778   : > { %v2277_v18 = vsub.f32 %v1326_v17, %v1353_v16  ;;  %v1350_v20 = vpop.xlane.xlu1 %1349 }
0x1779   : > { %v2279_v21 = vsub.f32 %v1321_v55, %v1350_v20  ;;  %v1471_v20 = vsel %vm1203_vm4, %v2201_v43, %v2141_v40 }
0x177a   : > { %v1376_v28 = vmul.f32 1.442695, %v2277_v18 }
0x177b   : > { %v1374_v14 = vmul.f32 1.442695, %v2279_v21  ;;  %v1383_v26 = vpop.xlane.xlu0 %1382 }
0x177c   : > { %1908 = vpow2.f32 %v1376_v28  ;;  %v1380_v23 = vpop.xlane.xlu1 %1379 }
0x177d   : > { %1910 = vpow2.f32 %v1374_v14  ;;  %v1472_v14 = vsel %vm1203_vm4, %v2221_v61, %v2119_v19 }
0x177e   : > { %1912 = vlog2.f32 %v1380_v23 }
0x177f   : > { %1914 = vlog2.f32 %v1383_v26  ;;  %v1389_v33 = vpop.xlane.xlu0 %1388 }
0x1780   : > { %v1386_v29 = vpop.xlane.xlu1 %1385 }
0x1781   : > { %1916 = vlog2.f32 %v1386_v29 }
0x1782   : > { %1918 = vlog2.f32 %v1389_v33 }
0x1783   : > { %v1395_v25 = vpop.xlane.xlu0 %1394 }
0x1784   : > { %v1392_v34 = vpop.xlane.xlu1 %1391 }
0x1785   : > { %1920 = vlog2.f32 %v1392_v34 }
0x1786   : > { %v1909_v27 = vpop.eup %1908  ;;  %1922 = vlog2.f32 %v1395_v25 }
0x1787   : > { %v1911_v30 = vpop.eup %1910  ;;  %v1399_v31 = vsel %vm1329_vm8, %v1909_v27, 0.0 }
0x1788   : > { %1400 = vadd.xlane.f32.xlu0 %v1399_v31  ;;  %v1396_v32 = vsel %vm1329_vm8, %v1911_v30, 0.0  ;;  %v1913_v1 = vpop.eup %1912 }
0x1789   : > { %1397 = vadd.xlane.f32.xlu1 %v1396_v32  ;;  %v1915_v35 = vpop.eup %1914  ;;  %v1403_v62 = vmul.f32 0.6931472, %v1913_v1 }
0x178a   : > { %v1405_v38 = vmul.f32 0.6931472, %v1915_v35 }
0x178b   : > { %v1917_v36 = vpop.eup %1916  ;;  %v1418_v11 = vsub.f32 %v2253_v22, %v1403_v62 }
0x178c   : > { %v1919_v5 = vpop.eup %1918  ;;  %v1407_v39 = vmul.f32 0.6931472, %v1917_v36  ;;  %v1419_v49 = vsub.f32 %v2251_v41, %v1405_v38 }
0x178d   : > { %v1409_v45 = vmul.f32 0.6931472, %v1919_v5 }
0x178e   : > { %v1420_v48 = vsub.f32 %v2259_v46, %v1407_v39 }
0x178f   : > { %v1921_v44 = vpop.eup %1920  ;;  %v1421_v22 = vsub.f32 %v2255_v42, %v1409_v45  ;;  %v1467_v42 = vsel %vm1203_vm4, %v2119_v19, %v2221_v61 }
0x1790   : > { %v1411_v47 = vmul.f32 0.6931472, %v1921_v44  ;;  %v1923_v13 = vpop.eup %1922 }
0x1791   : > { %v1413_v9 = vmul.f32 0.6931472, %v1923_v13 }
0x1792   : > { %v1422_v53 = vsub.f32 %v2265_v51, %v1411_v47  ;;  %v1466_v51 = vsel %vm1203_vm4, %v2087_v52, %v2247_v37 }
0x1793   : > { %v1423_v54 = vsub.f32 %v2262_v50, %v1413_v9 }
0x179a   : > { %1442 = vrot.lane.b32.xlu1 %v1418_v11, %s1940_s14 }
0x179e   : > { %1446 = vrot.lane.b32.xlu1 %v1420_v48, %s1940_s14  ;;  %1444 = vrot.lane.b32.xlu0 %v1419_v49, %s1940_s14 }
0x17a2   : > { %1450 = vrot.lane.b32.xlu0 %v1422_v53, %s1940_s14  ;;  %1448 = vrot.lane.b32.xlu1 %v1421_v22, %s1940_s14 }
0x17a6   : > { %1452 = vrot.lane.b32.xlu1 %v1423_v54, %s1940_s14 }
0x1815   : > { %v1401_v46 = vpop.xlane.xlu0 %1400 }
0x1816   : > { %1924 = vlog2.f32 %v1401_v46  ;;  %v1398_v41 = vpop.xlane.xlu1 %1397 }
0x1817   : > { %1926 = vlog2.f32 %v1398_v41 }
0x1819   : > { %v1445_v50 = vpop.permute.xlu0 %1444 }
0x181a   : > { %v1475_v17 = vsel %vm412_vm3, %v1467_v42, %v1445_v50  ;;  %v1443_v15 = vpop.permute.xlu1 %1442 }
0x181b   : > { %1484 = vst.msk [vmem:[%s2302_s27 + $0x8] sm:$0xff] %vm1482_vm9, %v1475_v17  ;;  %v1474_v55 = vsel %vm412_vm3, %v1466_v51, %v1443_v15 }
0x181c   : > { %1483 = vst.msk [vmem:[%s2302_s27] sm:$0xff] %vm1482_vm9, %v1474_v55 }
0x181d   : > { %v1451_v57 = vpop.permute.xlu0 %1450 }
0x181e   : > { %v1478_v58 = vsel %vm412_vm3, %v1470_v56, %v1451_v57  ;;  %v1447_v63 = vpop.permute.xlu1 %1446 }
0x181f   : > { %1487 = vst.msk [vmem:[%s2302_s27 + $0x20] sm:$0xff] %vm1482_vm9, %v1478_v58  ;;  %v1476_v0 = vsel %vm412_vm3, %v1468_v60, %v1447_v63 }
0x1820   : > { %v1925_v2 = vpop.eup %1924  ;;  %1485 = vst.msk [vmem:[%s2302_s27 + $0x10] sm:$0xff] %vm1482_vm9, %v1476_v0 }
0x1821   : > { %v1927_v3 = vpop.eup %1926  ;;  %v1417_v4 = vmul.f32 0.6931472, %v1925_v2 }
0x1822   : > { %v1415_v6 = vmul.f32 0.6931472, %v1927_v3  ;;  %v1449_v8 = vpop.permute.xlu1 %1448 }
0x1823   : > { %v1477_v10 = vsel %vm412_vm3, %v1469_v7, %v1449_v8  ;;  %v1425_v12 = vsub.f32 %v2277_v18, %v1417_v4  ;;  %v1473_v18 = vsel %vm1203_vm4, %v2247_v37, %v2087_v52 }
0x1824   : > { %1486 = vst.msk [vmem:[%s2302_s27 + $0x18] sm:$0xff] %vm1482_vm9, %v1477_v10  ;;  %v1424_v16 = vsub.f32 %v2279_v21, %v1415_v6 }
0x1825   : > { %1456 = vrot.lane.b32.xlu1 %v1425_v12, %s1940_s14 }
0x1826   : > { %1454 = vrot.lane.b32.xlu0 %v1424_v16, %s1940_s14  ;;  %v1453_v59 = vpop.permute.xlu1 %1452 }
0x1827   : > { %v1479_v24 = vsel %vm412_vm3, %v1471_v20, %v1453_v59 }
0x1828   : > { %1488 = vst.msk [vmem:[%s2302_s27 + $0x28] sm:$0xff] %vm1482_vm9, %v1479_v24 }
0x1897   : > { %v1457_v28 = vpop.permute.xlu1 %1456 }
0x1898   : > { %v1481_v21 = vsel %vm412_vm3, %v1473_v18, %v1457_v28  ;;  %v1455_v23 = vpop.permute.xlu0 %1454 }
0x1899   : > { %1490 = vst.msk [vmem:[%s2302_s27 + $0x38] sm:$0xff] %vm1482_vm9, %v1481_v21  ;;  %v1480_v40 = vsel %vm412_vm3, %v1472_v14, %v1455_v23 }
0x189a   : > { %1489 = vst.msk [vmem:[%s2302_s27 + $0x30] sm:$0xff] %vm1482_vm9, %v1480_v40 }
0x189b PF: > { %s16_s21 = sadd.s32 1, %s1934_s21  }
0x189c   : > { %p13_p4 = scmp.ge.s32.totalorder %s16_s21, 4  }
0x189e   :  { %15 = sbr.rel (!%p13_p4) target bundleno = 1 (0x1), region = 74 }

</bundles_post_ra>
